<compile_context>
chip_gen: v7x
topology: tpu7x:2x2x1
jax: 0.10.0
libtpu: 0.0.40
codegen_flags: <defaults>
</compile_context>

<pallas_src>
import functools

import jax
import jax.numpy as jnp
from jax.experimental import pallas as pl
from jax.experimental.pallas import tpu as pltpu


def _score_kernel(x_input_ref, x_pred_ref, out_ref, *, inv_m):
    # x_input_ref: (TB, D), x_pred_ref: (TB, M, D), out_ref: (1, TB)
    xi = x_input_ref[...].astype(jnp.float32)          # single upcast (v5e: no bf16 VPU)
    xp = x_pred_ref[...].astype(jnp.float32)

    # sub_result = x_pred - x_input.unsqueeze(1)  (broadcast over M)
    diff = xp - xi[:, None, :]                         # (TB, M, D)  VPU sub

    # torch.norm(sub, p=2, dim=2): sum of squares over D (one lane reduce/row),
    # then sqrt on the EUP slot.
    sq_sum = jnp.sum(diff * diff, axis=-1)             # (TB, M)
    norms = jnp.sqrt(sq_sum)                           # (TB, M)

    # torch.mean(mse, dim=1): sum over M then multiply by static 1/M (no divide).
    score = jnp.sum(norms, axis=-1) * inv_m            # (TB,)

    # Lane-dense store: TB sits on the lane axis of the (1, TB) output block.
    out_ref[...] = score.reshape(1, -1).astype(out_ref.dtype)


def _choose_tb(B, M, D, itemsize=4, target_block_bytes=4 * 1024 * 1024):
    """Pick batch-tile size: ~4 MiB of x_pred+x_input per block (double-buffered
    this stays far under v7x's 64 MiB VMEM), multiple of 8 sublanes, and a
    multiple of 128 lanes when the grid has more than one step (lane-dense out)."""
    per_row = (M + 1) * D * itemsize
    tb = max(1, target_block_bytes // per_row)
    b8 = -(-B // 8) * 8                    # B rounded up to a sublane multiple
    if tb >= b8:
        return b8                          # single grid step, whole (padded) batch
    tb = (tb // 128) * 128
    return max(tb, 128)


def score_function(x_input, x_pred):
    """Pallas TPU implementation of ScoreFunction.forward.

    x_input: (B, D)    float32
    x_pred:  (B, M, D) float32 (M == mask_num)
    returns: (B, 1)    float32
    """
    B, D = x_input.shape
    Bp, M, Dp = x_pred.shape
    assert B == Bp and D == Dp, "shape mismatch between x_input and x_pred"

    TB = _choose_tb(B, M, D)
    nb = pl.cdiv(B, TB)
    B_pad = nb * TB

    # Zero-pad partial batch tiles; padded rows yield sqrt(0)=0 and are sliced off.
    if B_pad != B:
        x_input = jnp.pad(x_input, ((0, B_pad - B), (0, 0)))
        x_pred = jnp.pad(x_pred, ((0, B_pad - B), (0, 0), (0, 0)))

    block_bytes = TB * (M + 1) * D * 4
    # Leave headroom under v7x's 64 MiB physical VMEM; 32 MiB covers the default case.
    vmem_limit = int(min(48 * 1024 * 1024, max(32 * 1024 * 1024, 3 * block_bytes)))

    kernel = functools.partial(_score_kernel, inv_m=1.0 / M)

    out_flat = pl.pallas_call(
        kernel,
        out_shape=jax.ShapeDtypeStruct((1, B_pad), jnp.float32),
        grid=(nb,),
        in_specs=[
            pl.BlockSpec((TB, D), lambda i: (i, 0)),        # x_input tile
            pl.BlockSpec((TB, M, D), lambda i: (i, 0, 0)),  # x_pred tile (dominant traffic)
        ],
        out_specs=pl.BlockSpec((1, TB), lambda i: (0, i)),  # lane-dense scores
        compiler_params=pltpu.CompilerParams(
            dimension_semantics=("parallel",),              # shard batch across TCs (v7x)
            vmem_limit_bytes=vmem_limit,
        ),
        cost_estimate=pl.CostEstimate(
            flops=3 * B_pad * M * D,
            transcendentals=B_pad * M,
            bytes_accessed=(B_pad * D + B_pad * M * D + B_pad) * 4,
        ),
    )(x_input, x_pred)

    # Back to the module's (B, 1) keepdim layout (free layout plumbing).
    return out_flat[0, :B].reshape(B, 1)


def _reference(x_input, x_pred):
    diff = x_pred - x_input[:, None, :]
    mse = jnp.sqrt(jnp.sum(diff * diff, axis=-1))
    return jnp.mean(mse, axis=1, keepdims=True)


if __name__ == "__main__":
    # Small shapes consistent with the module: batch=2, mask_num=4, hidden=32.
    B, MASK_NUM, D = 2, 4, 32

    key = jax.random.PRNGKey(0)
    k1, k2 = jax.random.split(key)
    x_input = jax.random.normal(k1, (B, D), dtype=jnp.float32)
    x_pred = jax.random.normal(k2, (B, MASK_NUM, D), dtype=jnp.float32)

    out = score_function(x_input, x_pred)
    out = jax.block_until_ready(out)

    ref = _reference(x_input, x_pred)
    assert out.shape == (B, 1), out.shape
    assert jnp.allclose(out, ref, atol=1e-5, rtol=1e-5), (out, ref)

    print("KERNEL_OK")
</pallas_src>

<mosaic_0001>
module attributes {stable_mosaic.version = 11 : i64} {
  func.func @_score_kernel(%arg0: i32, %arg1: memref<8x32xf32, #tpu.memory_space<vmem>>, %arg2: memref<8x4x32xf32, #tpu.memory_space<vmem>>, %arg3: memref<1x8xf32, #tpu.memory_space<vmem>>) attributes {dimension_semantics = [#tpu.dimension_semantics<parallel>], iteration_bounds = array<i64: 1>, scalar_prefetch = 0 : i64, scratch_operands = 0 : i64, tpu.core_type = #tpu.core_type<tc>, window_params = [{transform_indices = @transform_0, window_bounds = array<i64: 8, 32>}, {transform_indices = @transform_1, window_bounds = array<i64: 8, 4, 32>}, {transform_indices = @transform_2, window_bounds = array<i64: 1, 8>}]} {
    %c0 = arith.constant 0 : index
    %c0_0 = arith.constant 0 : index
    %0 = vector.load %arg1[%c0, %c0_0] : memref<8x32xf32, #tpu.memory_space<vmem>>, vector<8x32xf32>
    %c0_1 = arith.constant 0 : index
    %c0_2 = arith.constant 0 : index
    %c0_3 = arith.constant 0 : index
    %1 = vector.load %arg2[%c0_1, %c0_2, %c0_3] : memref<8x4x32xf32, #tpu.memory_space<vmem>>, vector<8x4x32xf32>
    %2 = vector.shape_cast %0 : vector<8x32xf32> to vector<8x1x32xf32>
    %3 = vector.broadcast %2 : vector<8x1x32xf32> to vector<8x4x32xf32>
    %4 = arith.subf %1, %3 : vector<8x4x32xf32>
    %5 = arith.mulf %4, %4 : vector<8x4x32xf32>
    %cst = arith.constant dense<0.000000e+00> : vector<8x4xf32>
    %6 = vector.multi_reduction <add>, %5, %cst [2] : vector<8x4x32xf32> to vector<8x4xf32>
    %7 = math.sqrt %6 : vector<8x4xf32>
    %cst_4 = arith.constant dense<0.000000e+00> : vector<8xf32>
    %8 = vector.multi_reduction <add>, %7, %cst_4 [1] : vector<8x4xf32> to vector<8xf32>
    %cst_5 = arith.constant 2.500000e-01 : f32
    %9 = vector.broadcast %cst_5 : f32 to vector<8xf32>
    %10 = arith.mulf %8, %9 : vector<8xf32>
    %11 = vector.shape_cast %10 : vector<8xf32> to vector<1x8xf32>
    %c0_6 = arith.constant 0 : index
    %c0_7 = arith.constant 0 : index
    %12 = vector.load %arg3[%c0_6, %c0_7] : memref<1x8xf32, #tpu.memory_space<vmem>>, vector<1x8xf32>
    tpu.vector_store %arg3[%c0_6, %c0_7], %11 {strides = array<i32>} : memref<1x8xf32, #tpu.memory_space<vmem>>, vector<1x8xf32>,
    return
  }
  func.func @transform_0(%arg0: i32) -> (i32, i32) {
    %c0_i32 = arith.constant 0 : i32
    %c0_i32_0 = arith.constant 0 : i32
    return %arg0, %c0_i32 : i32, i32
  }
  func.func @transform_1(%arg0: i32) -> (i32, i32, i32) {
    %c0_i32 = arith.constant 0 : i32
    %c0_i32_0 = arith.constant 0 : i32
    %c0_i32_1 = arith.constant 0 : i32
    return %arg0, %c0_i32, %c0_i32_0 : i32, i32, i32
  }
  func.func @transform_2(%arg0: i32) -> (i32, i32) {
    %c0_i32 = arith.constant 0 : i32
    %c0_i32_0 = arith.constant 0 : i32
    return %c0_i32, %arg0 : i32, i32
  }
}

</mosaic_0001>

<bundles_post_ra>
// kernel: tpu_custom_call.1
= control target key start
LH: loop header
LB: loop body
LE: loop exit
PB: predicated region body
PF: predicated region fallthrough
CT: control target
= control target key end

     0   :  { %7 = vsyncpa [#allocation3], 0  ;;  %s528_s0 = inlined_call_operand.hbm [shape: f32[8,32], index: 0, kind: input, shape index: {}]   ;;  %s529_s1 = inlined_call_operand.hbm [shape: f32[8,4,32], index: 1, kind: input, shape index: {}]   ;;  %s530_s2 = inlined_call_operand.hbm [shape: f32[1,8], index: 2, kind: output, shape index: {}]  }
   0x1   :  { %8 = vsyncpa [#allocation6], 0 }
   0x2   :  { %9 = vsyncpa [#allocation4], 0  ;;  %s415_s9 = smov [#allocation2]   ;;  %s416_s11 = smov [#allocation5]  }
   0x3   :  { %s16_s10 = sshll.u32 %s415_s9, 4  ;;  %s25_s12 = sshll.u32 %s416_s11, 4  ;;  %s17_s10 = int_to_ptr.vmem [resolvable:$true] %s16_s10  ;;  %s436_s12 = int_to_ptr.vmem [resolvable:$true] %s25_s12 }
   0x4   :  { %s343_s15 = scalar_lea.hbm %s528_s0, 128 }
   0x5   :  { %p344_p0 = scmp.ne.s32.totalorder %s528_s0, %s343_s15  ;;  %p347_p1 = scmp.lt.u32.totalorder %s343_s15, %s528_s0 }
   0x7   :  { %p349_p2 = pnand %p347_p1, %p344_p0 }
   0x9   :  { %352 = shalt.err (!%p349_p2)
}
   0xa   :  { %s353_s20 = scalar_lea.vmem %s17_s10, 128  ;;  %p358_p4 = scmp.lt.s32.totalorder %s17_s10, %s17_s10 }
   0xb   :  { %p354_p3 = scmp.ne.s32.totalorder %s17_s10, %s353_s20  ;;  %p359_p5 = scmp.lt.s32.totalorder %s353_s20, %s353_s20 }
   0xd   :  { %p360_p6 = por %p359_p5, %p358_p4 }
   0xf   :  { %p361_p7 = pnand %p360_p6, %p354_p3 }
  0x11   :  { %364 = shalt.err (!%p361_p7)
}
  0x12   :  { %19 = dma.hbm_to_vmem [thread:$0]  %s528_s0, 128, %s17_s10, [#allocation3]  }
  0x13   :  { %s365_s25 = scalar_lea.hbm %s529_s1, 512 }
  0x14   :  { %p366_p8 = scmp.ne.s32.totalorder %s529_s1, %s365_s25  ;;  %p369_p9 = scmp.lt.u32.totalorder %s365_s25, %s529_s1 }
  0x16   :  { %p371_p10 = pnand %p369_p9, %p366_p8 }
  0x18   :  { %374 = shalt.err (!%p371_p10)
}
  0x19   :  { %s375_s30 = scalar_lea.vmem %s436_s12, 512  ;;  %p380_p12 = scmp.lt.s32.totalorder %s436_s12, %s436_s12 }
  0x1a   :  { %p376_p11 = scmp.ne.s32.totalorder %s436_s12, %s375_s30  ;;  %p381_p13 = scmp.lt.s32.totalorder %s375_s30, %s375_s30 }
  0x1c   :  { %p382_p0 = por %p381_p13, %p380_p12 }
  0x1e   :  { %p383_p1 = pnand %p382_p0, %p376_p11 }
  0x20   :  { %386 = shalt.err (!%p383_p1)
}
  0x21   :  { %s417_s0 = smov 64   ;;  %s418_s3 = smov 4  }
  0x22   :  { %31 = dma.hbm_to_vmem [thread:$0]  %s529_s1, 512, %s436_s12, [#allocation6], %s417_s0, %s417_s0, %s418_s3  }
  0x23   :  { %409 = dma.done.wait [#allocation3], 128  }
  0x24   :  { %410 = vsyncadd [#allocation3], 4294967168 }
  0x25   :  { %411 = dma.done.wait [#allocation6], 512  }
  0x26   :  { %412 = vsyncadd [#allocation6], 4294966784  ;;  %v52_v0 = vlaneseq  ;;  %v419_v1 = vmov 1966171168   ;;  %v38_v8 = vld [vmem:[#allocation2] sm:$0xff]  ;;  %vm153_vm0 = vcmask 257024  }
  0x27   :  { %v50_v2 = vunpack.c.l.s4 %v419_v1  ;;  %v48_v11 = vcombine.high %v38_v8, %v38_v8  ;;  %v39_v15 = vld [vmem:[#allocation5] sm:$0xf]  ;;  %v41_v20 = vld [vmem:[#allocation5 + $0x8] sm:$0xf]  ;;  %v40_v21 = vld [vmem:[#allocation5 + $0x4] sm:$0xf] }
  0x28   :  { %v53_v3 = vshrl.u32 %v52_v0, 7  ;;  %v243_v4 = vand.u32 127, %v52_v0  ;;  %v43_v27 = vld [vmem:[#allocation5 + $0x10] sm:$0xf]  ;;  %v42_v28 = vld [vmem:[#allocation5 + $0xc] sm:$0xf] }
  0x29   :  { %v51_v5 = vunpack.c.0.s8 %v50_v2  ;;  %v44_v36 = vld [vmem:[#allocation5 + $0x14] sm:$0xf]  ;;  %v45_v39 = vld [vmem:[#allocation5 + $0x18] sm:$0xf]  ;;  %v46_v48 = vld [vmem:[#allocation5 + $0x1c] sm:$0xf] }
  0x2a   :  { %v467_v6 = vsub.s32 %v243_v4, %v53_v3  ;;  %v99_v10 = vsub.s32 0, %v53_v3  ;;  %vm276_vm2 = vcmask 1041409   ;;  %vm278_vm3 = vcmask 1042434   ;;  %s420_s1 = smov [#allocation7]  }
  0x2b   :  { %v54_v7 = vsub.s32 %v51_v5, %v53_v3  ;;  %vm280_vm5 = vcmask 1043459   ;;  %vm282_vm8 = vcmask 1044484   ;;  %vm284_vm12 = vcmask 1045509   ;;  %s310_s6 = sshll.u32 %s420_s1, 4  ;;  %s311_s6 = int_to_ptr.vmem [resolvable:$true] %s310_s6 }
  0x2c   :  { %s387_s7 = scalar_lea.vmem %s311_s6, 16  ;;  %s391_s8 = scalar_lea.vmem %s311_s6, 32 }
  0x2d   :  { %v55_v9 = vrot.slane %v38_v8, %v54_v7  ;;  %v62_v14 = vrot.slane %v48_v11, %v54_v7  ;;  %p388_p2 = scmp.ne.s32.totalorder %s311_s6, %s387_s7  ;;  %p392_p3 = scmp.lt.s32.totalorder %s311_s6, %s311_s6 }
  0x2e   :  { %p393_p4 = scmp.lt.s32.totalorder %s391_s8, %s387_s7 }
  0x2f   :  { %v71_v12 = vrot.slane %v55_v9, %v54_v7  ;;  %v63_v13 = vcombine.high %v55_v9, %v55_v9  ;;  %v78_v19 = vrot.slane %v62_v14, %v54_v7  ;;  %v64_v22 = vcombine.high %v62_v14, %v62_v14 }
  0x30   :  { %p394_p5 = por %p393_p4, %p392_p3 }
  0x31   :  { %v100_v16 = vrot.slane %v71_v12, %v99_v10  ;;  %v93_v17 = vcombine.high %v71_v12, %v71_v12  ;;  %v85_v18 = vrot.slane %v63_v13, %v54_v7  ;;  %v116_v29 = vrot.slane %v78_v19, %v99_v10 }
  0x32   :  { %v92_v30 = vrot.slane %v64_v22, %v54_v7  ;;  %v94_v31 = vcombine.high %v78_v19, %v78_v19  ;;  %p395_p6 = pnand %p394_p5, %p388_p2 }
  0x33   :  { %v137_v23 = vsub.f32 %v39_v15, %v100_v16  ;;  %v108_v24 = vrot.slane %v93_v17, %v99_v10  ;;  %v104_v25 = vrot.slane %v85_v18, %v99_v10  ;;  %v95_v26 = vcombine.high %v85_v18, %v85_v18 }
  0x34   :  { %v141_v37 = vsub.f32 %v43_v27, %v116_v29  ;;  %v120_v38 = vrot.slane %v92_v30, %v99_v10  ;;  %v124_v40 = vrot.slane %v94_v31, %v99_v10  ;;  %v96_v41 = vcombine.high %v92_v30, %v92_v30 }
  0x35   :  { %v145_v32 = vmul.f32 %v137_v23, %v137_v23  ;;  %v139_v33 = vsub.f32 %v41_v20, %v108_v24  ;;  %v138_v34 = vsub.f32 %v40_v21, %v104_v25  ;;  %v112_v35 = vrot.slane %v95_v26, %v99_v10 }
  0x36   :  { %v149_v46 = vmul.f32 %v141_v37, %v141_v37  ;;  %v142_v47 = vsub.f32 %v44_v36, %v120_v38  ;;  %v128_v49 = vrot.slane %v96_v41, %v99_v10  ;;  %v143_v53 = vsub.f32 %v45_v39, %v124_v40 }
  0x37   :  { %v154_v42 = vsel %vm153_vm0, %v145_v32, 0.0  ;;  %v147_v43 = vmul.f32 %v139_v33, %v139_v33  ;;  %v146_v44 = vmul.f32 %v138_v34, %v138_v34  ;;  %v140_v45 = vsub.f32 %v42_v28, %v112_v35 }
  0x38   :  { %155 = vadd.xlane.f32.xlu0 %v154_v42  ;;  %v150_v55 = vmul.f32 %v142_v47, %v142_v47  ;;  %v144_v56 = vsub.f32 %v46_v48, %v128_v49  ;;  %v166_v57 = vsel %vm153_vm0, %v149_v46, 0.0  ;;  %v151_v58 = vmul.f32 %v143_v53, %v143_v53 }
  0x39   :  { %v160_v50 = vsel %vm153_vm0, %v147_v43, 0.0  ;;  %v157_v51 = vsel %vm153_vm0, %v146_v44, 0.0  ;;  %v148_v52 = vmul.f32 %v140_v45, %v140_v45 }
  0x3a   :  { %161 = vadd.xlane.f32.xlu1 %v160_v50  ;;  %v169_v59 = vsel %vm153_vm0, %v150_v55, 0.0  ;;  %v152_v60 = vmul.f32 %v144_v56, %v144_v56  ;;  %v172_v61 = vsel %vm153_vm0, %v151_v58, 0.0 }
  0x3b   :  { %v163_v54 = vsel %vm153_vm0, %v148_v52, 0.0 }
  0x3c   :  { %158 = vadd.xlane.f32.xlu0 %v157_v51  ;;  %v175_v62 = vsel %vm153_vm0, %v152_v60, 0.0 }
  0x3e   :  { %164 = vadd.xlane.f32.xlu1 %v163_v54 }
  0x40   :  { %167 = vadd.xlane.f32.xlu0 %v166_v57 }
  0x42   :  { %170 = vadd.xlane.f32.xlu1 %v169_v59 }
  0x44   :  { %173 = vadd.xlane.f32.xlu0 %v172_v61 }
  0x46   :  { %176 = vadd.xlane.f32.xlu1 %v175_v62 }
  0xc5   :  { %v156_v63 = vpop.xlane.xlu0 %155 }
  0xc6   :  { %327 = vrsqrt.f32 %v156_v63  ;;  %vm180_vm1 = vcmp.eq.f32.partialorder %v156_v63, inf  ;;  %vm182_vm4 = vcmp.eq.f32.partialorder %v156_v63, 0.0  ;;  %v183_v14 = vand.u32 2147483648, %v156_v63 }
  0xc7   :  { %v162_v0 = vpop.xlane.xlu1 %161 }
  0xc8   :  { %329 = vrsqrt.f32 %v162_v0  ;;  %vm194_vm6 = vcmp.eq.f32.partialorder %v162_v0, inf  ;;  %vm196_vm7 = vcmp.eq.f32.partialorder %v162_v0, 0.0  ;;  %v197_v16 = vand.u32 2147483648, %v162_v0 }
  0xc9   :  { %v159_v1 = vpop.xlane.xlu0 %158 }
  0xca   :  { %331 = vrsqrt.f32 %v159_v1  ;;  %vm187_vm9 = vcmp.eq.f32.partialorder %v159_v1, inf  ;;  %vm189_vm10 = vcmp.eq.f32.partialorder %v159_v1, 0.0  ;;  %v190_v20 = vand.u32 2147483648, %v159_v1 }
  0xcb   :  { %v165_v2 = vpop.xlane.xlu1 %164 }
  0xcc   :  { %333 = vrsqrt.f32 %v165_v2  ;;  %vm201_vm11 = vcmp.eq.f32.partialorder %v165_v2, inf  ;;  %vm203_vm13 = vcmp.eq.f32.partialorder %v165_v2, 0.0  ;;  %v204_v26 = vand.u32 2147483648, %v165_v2 }
  0xcd   :  { %v168_v3 = vpop.xlane.xlu0 %167 }
  0xce   :  { %335 = vrsqrt.f32 %v168_v3  ;;  %vm208_vm14 = vcmp.eq.f32.partialorder %v168_v3, inf  ;;  %vm210_vm15 = vcmp.eq.f32.partialorder %v168_v3, 0.0  ;;  %v211_v34 = vand.u32 2147483648, %v168_v3 }
  0xcf   :  { %v477_v4 = vpop.xlane.xlu1 %170 }
  0xd0   :  { %v328_v5 = vpop.eup %327  ;;  %337 = vrsqrt.f32 %v477_v4  ;;  %vm215_vm0 = vcmp.eq.f32.partialorder %v477_v4, inf  ;;  %v218_v40 = vand.u32 2147483648, %v477_v4 }
  0xd1   :  { %v179_v7 = vmul.f32 %v328_v5, %v156_v63  ;;  %v480_v8 = vpop.xlane.xlu0 %173 }
  0xd2   :  { %v330_v9 = vpop.eup %329  ;;  %339 = vrsqrt.f32 %v480_v8  ;;  %v225_v48 = vand.u32 2147483648, %v480_v8 }
  0xd3   :  { %v181_v10 = vsel %vm180_vm1, %v156_v63, %v179_v7  ;;  %v193_v11 = vmul.f32 %v330_v9, %v162_v0  ;;  %v483_v12 = vpop.xlane.xlu1 %176  ;;  %vm217_vm1 = vcmp.eq.f32.partialorder %v477_v4, 0.0 }
  0xd4   :  { %v332_v13 = vpop.eup %331  ;;  %341 = vrsqrt.f32 %v483_v12  ;;  %v184_v19 = vsel %vm182_vm4, %v183_v14, %v181_v10  ;;  %vm224_vm4 = vcmp.eq.f32.partialorder %v480_v8, 0.0  ;;  %v232_v54 = vand.u32 2147483648, %v483_v12 }
  0xd5   :  { %v195_v15 = vsel %vm194_vm6, %v162_v0, %v193_v11  ;;  %v186_v17 = vmul.f32 %v332_v13, %v159_v1  ;;  %v247_v27 = vrot.slane %v184_v19, %v467_v6  ;;  %vm231_vm6 = vcmp.eq.f32.partialorder %v483_v12, 0.0 }
  0xd6   :  { %v334_v18 = vpop.eup %333  ;;  %v198_v21 = vsel %vm196_vm7, %v197_v16, %v195_v15  ;;  %vm288_vm7 = vcmask 1047559  }
  0xd7   :  { %v188_v22 = vsel %vm187_vm9, %v159_v1, %v186_v17  ;;  %v200_v23 = vmul.f32 %v334_v18, %v165_v2  ;;  %v255_v32 = vrot.slane %v198_v21, %v467_v6  ;;  %vm302_vm9 = vcmask 57344  }
  0xd8   :  { %v336_v24 = vpop.eup %335  ;;  %v191_v25 = vsel %vm189_vm10, %v190_v20, %v188_v22 }
  0xd9   :  { %v251_v28 = vrot.slane %v191_v25, %v467_v6  ;;  %v202_v29 = vsel %vm201_vm11, %v165_v2, %v200_v23  ;;  %v207_v30 = vmul.f32 %v336_v24, %v168_v3 }
  0xda   :  { %v338_v31 = vpop.eup %337  ;;  %v205_v33 = vsel %vm203_vm13, %v204_v26, %v202_v29 }
  0xdb   :  { %v209_v35 = vsel %vm208_vm14, %v168_v3, %v207_v30  ;;  %v214_v36 = vmul.f32 %v338_v31, %v477_v4  ;;  %v259_v37 = vrot.slane %v205_v33, %v467_v6  ;;  %v277_v38 = vsel %vm276_vm2, %v251_v28, %v247_v27 }
  0xdc   :  { %v340_v39 = vpop.eup %339  ;;  %v212_v41 = vsel %vm210_vm15, %v211_v34, %v209_v35  ;;  %v279_v42 = vsel %vm278_vm3, %v255_v32, %v277_v38  ;;  %vm222_vm2 = vcmp.eq.f32.partialorder %v480_v8, inf  ;;  %vm229_vm3 = vcmp.eq.f32.partialorder %v483_v12, inf }
  0xdd   :  { %v216_v43 = vsel %vm215_vm0, %v477_v4, %v214_v36  ;;  %v221_v44 = vmul.f32 %v340_v39, %v480_v8  ;;  %v263_v45 = vrot.slane %v212_v41, %v467_v6  ;;  %v281_v46 = vsel %vm280_vm5, %v259_v37, %v279_v42 }
  0xde   :  { %v342_v47 = vpop.eup %341  ;;  %v219_v49 = vsel %vm217_vm1, %v218_v40, %v216_v43  ;;  %vm286_vm5 = vcmask 1046534  }
  0xdf   :  { %v228_v50 = vmul.f32 %v342_v47, %v483_v12  ;;  %v223_v51 = vsel %vm222_vm2, %v480_v8, %v221_v44  ;;  %v267_v52 = vrot.slane %v219_v49, %v467_v6  ;;  %v283_v53 = vsel %vm282_vm8, %v263_v45, %v281_v46 }
  0xe0   :  { %v226_v55 = vsel %vm224_vm4, %v225_v48, %v223_v51  ;;  %vm291_vm8 = vcmask 31744  }
  0xe1   :  { %v230_v56 = vsel %vm229_vm3, %v483_v12, %v228_v50  ;;  %v271_v57 = vrot.slane %v226_v55, %v467_v6  ;;  %v285_v58 = vsel %vm284_vm12, %v267_v52, %v283_v53 }
  0xe2   :  { %v233_v59 = vsel %vm231_vm6, %v232_v54, %v230_v56 }
  0xe3   :  { %v275_v60 = vrot.slane %v233_v59, %v467_v6  ;;  %v287_v61 = vsel %vm286_vm5, %v271_v57, %v285_v58 }
  0xe5   :  { %v289_v62 = vsel %vm288_vm7, %v275_v60, %v287_v61 }
  0xe6   :  { %v292_v63 = vsel %vm291_vm8, %v289_v62, 0.0 }
  0xe7   :  { %293 = vadd.xlane.f32.xlu0 %v292_v63 }
 0x174   :  { %v294_v0 = vpop.xlane.xlu0 %293 }
 0x175   :  { %v295_v1 = vmul.f32 0.25, %v294_v0 }
 0x177   :  { %v300_v2 = vrot.slane %v295_v1, %v467_v6 }
 0x179   :  { %303 = vst.msk [vmem:[#allocation7] sm:$0x1] %vm302_vm9, %v300_v2 }
 0x17a   :  { %398 = shalt.err (!%p395_p6)
}
 0x17b   :  { %s399_s11 = scalar_lea.hbm %s530_s2, 16 }
 0x17c   :  { %p400_p7 = scmp.ne.s32.totalorder %s530_s2, %s399_s11  ;;  %p403_p8 = scmp.lt.u32.totalorder %s399_s11, %s530_s2 }
 0x17e   :  { %p405_p9 = pnand %p403_p8, %p400_p7 }
 0x180   :  { %408 = shalt.err (!%p405_p9)
}
 0x181   :  { %313 = dma.vmem_to_hbm [thread:$0]  %s311_s6, 16, %s530_s2, [#allocation4]  }
 0x182   :  { %413 = dma.done.wait [#allocation4], 16  }
 0x183   :  { %414 = vsyncadd [#allocation4], 4294967280 }
 0x184   :  { %317 = vsyncpa [#allocation3], 1 }
 0x185   :  { %318 = vsyncpa [#allocation6], 1 }
 0x186   :  { %319 = vsyncpa [#allocation4], 1 }

</bundles_post_ra>
